<compile_context>
chip_gen: v6e
topology: v6e:2x2x1
jax: 0.10.0
libtpu: 0.0.40
codegen_flags: <defaults>
</compile_context>

<pallas_src>
import functools

import jax
import jax.numpy as jnp
from jax.experimental import pallas as pl
from jax.experimental.pallas import tpu as pltpu

LANES = 128  # every feature dim is zero-padded to this lane width


# ------------------------------- Pallas kernels -------------------------------

def _fused_gnn_kernel(a_ref, x_ref, w1_ref, b1_ref, w2_ref, b2_ref,
                      w3_ref, b3_ref, w4_ref, b4_ref, pool_ref, o_ref):
    """Whole forward with A resident in VMEM: 4 GCN layers + global mean pool.

    All refs are whole arrays in VMEM (no grid).  A, X, W* are bf16; biases and
    pool are f32.  Matmuls accumulate in f32 on the MXU.
    """
    a = a_ref[...]                                              # bf16 [Np, Np]

    def layer(h_bf16, w_ref, b_ref, relu):
        hw = jnp.dot(h_bf16, w_ref[...], preferred_element_type=jnp.float32)
        y = jnp.dot(a, hw.astype(jnp.bfloat16),
                    preferred_element_type=jnp.float32) + b_ref[...]
        if relu:
            y = jnp.maximum(y, 0.0)
        return y.astype(jnp.bfloat16)

    h = layer(x_ref[...], w1_ref, b1_ref, True)                 # GCN 1 + ReLU
    h = layer(h, w2_ref, b2_ref, True)                          # GCN 2 + ReLU
    h = layer(h, w3_ref, b3_ref, True)                          # GCN 3 + ReLU
    hw = jnp.dot(h, w4_ref[...], preferred_element_type=jnp.float32)
    h4 = jnp.dot(a, hw.astype(jnp.bfloat16),
                 preferred_element_type=jnp.float32) + b4_ref[...]   # GCN 4 (no relu)
    # global_mean_pool; padded pool rows/cols are zero -> exact, f32 for accuracy.
    o_ref[...] = jnp.dot(pool_ref[...], h4, preferred_element_type=jnp.float32)


def _gcn_layer_kernel(a_ref, h_ref, w_ref, b_ref, o_ref, acc_ref, *, relu):
    """Row tile of  act( A @ (H @ W) + b ).  Grid = (row_tiles, k_tiles).

    The feature transform (H @ W) is fused into the K sweep so no intermediate
    hits HBM; the extra small matmul is free MXU filler under the A DMA stream.
    """
    k = pl.program_id(1)

    @pl.when(k == 0)
    def _():
        acc_ref[...] = jnp.zeros_like(acc_ref)

    hw = jnp.dot(h_ref[...], w_ref[...], preferred_element_type=jnp.float32)
    acc_ref[...] += jnp.dot(a_ref[...], hw.astype(a_ref.dtype),
                            preferred_element_type=jnp.float32)

    @pl.when(k == pl.num_programs(1) - 1)
    def _():
        y = acc_ref[...] + b_ref[...]
        if relu:
            y = jnp.maximum(y, 0.0)
        o_ref[...] = y.astype(o_ref.dtype)


# ------------------------------- pallas_call wrappers -------------------------------

def _fused_forward(a_bf, x_p, wp, pool, *, vmem_limit_bytes):
    gp = pool.shape[0]
    (w1, b1), (w2, b2), (w3, b3), (w4, b4) = wp
    return pl.pallas_call(
        _fused_gnn_kernel,
        out_shape=jax.ShapeDtypeStruct((gp, LANES), jnp.float32),
        compiler_params=pltpu.CompilerParams(vmem_limit_bytes=vmem_limit_bytes),
    )(a_bf, x_p, w1, b1, w2, b2, w3, b3, w4, b4, pool)


def _gcn_layer(a, h, w, b, *, relu, out_dtype, tm, tk, vmem_limit_bytes):
    m, n = a.shape
    grid = (m // tm, n // tk)
    return pl.pallas_call(
        functools.partial(_gcn_layer_kernel, relu=relu),
        out_shape=jax.ShapeDtypeStruct((m, LANES), out_dtype),
        grid_spec=pltpu.PrefetchScalarGridSpec(
            num_scalar_prefetch=0,
            grid=grid,
            in_specs=[
                pl.BlockSpec((tm, tk), lambda i, k: (i, k)),        # A row/K tile
                pl.BlockSpec((tk, LANES), lambda i, k: (k, 0)),     # H K tile (128 lanes)
                pl.BlockSpec((LANES, LANES), lambda i, k: (0, 0)),  # W (resident)
                pl.BlockSpec((1, LANES), lambda i, k: (0, 0)),      # bias (resident)
            ],
            out_specs=pl.BlockSpec((tm, LANES), lambda i, k: (i, 0)),
            scratch_shapes=[pltpu.VMEM((tm, LANES), jnp.float32)],
        ),
        compiler_params=pltpu.CompilerParams(
            dimension_semantics=("parallel", "arbitrary"),
            vmem_limit_bytes=vmem_limit_bytes),
    )(a, h, w, b)


def _tiled_forward(a_bf, x_p, wp, pool, *, tm, tk, vmem_limit_bytes):
    (w1, b1), (w2, b2), (w3, b3), (w4, b4) = wp
    kw = dict(tm=tm, tk=tk, vmem_limit_bytes=vmem_limit_bytes)
    h = _gcn_layer(a_bf, x_p, w1, b1, relu=True, out_dtype=jnp.bfloat16, **kw)
    h = _gcn_layer(a_bf, h, w2, b2, relu=True, out_dtype=jnp.bfloat16, **kw)
    h = _gcn_layer(a_bf, h, w3, b3, relu=True, out_dtype=jnp.bfloat16, **kw)
    h4 = _gcn_layer(a_bf, h, w4, b4, relu=False, out_dtype=jnp.float32, **kw)
    # global_mean_pool: [Gp,Np]@[Np,128] is negligible next to the A streams above
    # and avoids any f32 re-read of A (the old pool@A pass).
    return jnp.dot(pool, h4, preferred_element_type=jnp.float32)


# ---------------- sizing: VMEM budget, fused-fit test, tile choice ----------------

def _round_up(x, m):
    return ((x + m - 1) // m) * m


def _vmem_limit_bytes():
    """Generation-aware VMEM request: ~3/4 of physical, capped at 96 MiB
    (=> ~48 MiB on v7x's 64 MiB VMEM, 96 MiB on v5e/v6e)."""
    try:
        cap = int(pltpu.get_tpu_info().vmem_capacity_bytes)
    except Exception:
        cap = 128 << 20
    return int(min(cap * 3 // 4, 96 << 20))


def _fused_fits(n_pad, gp, vmem_limit_bytes):
    """Can A (bf16) + activations + pool live in VMEM for the fused kernel?"""
    a_bytes = n_pad * n_pad * 2
    act_bytes = 8 * n_pad * LANES * 4        # X/H/HW temporaries (f32-equivalent bound)
    pool_bytes = gp * n_pad * 4
    return a_bytes + act_bytes + pool_bytes + (4 << 20) <= vmem_limit_bytes


def _choose_tiles(n_pad, vmem_limit_bytes):
    """A-tile (tm, tk) for the fallback path.  tm kept small enough that the
    'parallel' row axis has >=2 tiles (both v7x TensorCores active); tk grown as
    large as divides n_pad (amortizes per-grid-step overhead against the A DMA).
    Footprint check uses the real double-buffered bf16 tile sizes."""
    tm = 256
    while tm > 128 and n_pad // tm < 2:
        tm //= 2
    tm = min(tm, n_pad)
    budget = max(vmem_limit_bytes - (8 << 20), 4 << 20)
    tk = 128
    while (tk * 2 <= min(n_pad, 2048)
           and n_pad % (tk * 2) == 0
           and 2 * (tm * (tk * 2) + (tk * 2) * LANES) * 2 <= budget):
        tk *= 2
    return tm, tk


# ---------------- glue: normalization, pooling matrix, padding, params ----------------

def gcn_norm_dense(edge_index, edge_weight, num_nodes, padded_nodes,
                   dtype=jnp.bfloat16):
    """Dense GCN-normalized adjacency with self-loops (PyG GCNConv semantics),
    built directly in `dtype` so no separate cast pass touches HBM.
    Note: degree is computed over dst (in-degree), matching PyG gcn_norm for
    symmetric/undirected edge lists."""
    src = edge_index[0].astype(jnp.int32)
    dst = edge_index[1].astype(jnp.int32)
    loop = jnp.arange(num_nodes, dtype=jnp.int32)
    src = jnp.concatenate([src, loop])
    dst = jnp.concatenate([dst, loop])
    ew = jnp.concatenate([edge_weight.astype(jnp.float32),
                          jnp.ones((num_nodes,), jnp.float32)])

    deg = jnp.zeros((num_nodes,), jnp.float32).at[dst].add(ew)
    dinv = jnp.where(deg > 0, jax.lax.rsqrt(deg), 0.0)
    norm = (dinv[src] * ew * dinv[dst]).astype(dtype)

    # A_hat[dst, src] = norm  so that  A_hat @ X aggregates src features into dst.
    a = jnp.zeros((padded_nodes, padded_nodes), dtype).at[dst, src].add(norm)
    return a


def mean_pool_matrix(batch, padded_graphs, padded_nodes):
    """P[g, n] = 1/|graph g| for real nodes of graph g; zero on padded rows/cols."""
    n = batch.shape[0]
    b_pad = jnp.full((padded_nodes,), -1, jnp.int32).at[:n].set(batch.astype(jnp.int32))
    onehot = (b_pad[None, :] == jnp.arange(padded_graphs, dtype=jnp.int32)[:, None])
    onehot = onehot.astype(jnp.float32)
    counts = jnp.maximum(onehot.sum(axis=1, keepdims=True), 1.0)
    return onehot / counts


def _pad_params(params):
    """Zero-pad every W to [128,128] (bf16) and b to [1,128] (f32) so all H blocks,
    accumulators and stores are 128-lane dense (no masked partial stores)."""
    out = []
    for w, b in params:
        fin, fout = w.shape
        wp = jnp.zeros((LANES, LANES), jnp.float32).at[:fin, :fout].set(w)
        bp = jnp.zeros((1, LANES), jnp.float32).at[:, :fout].set(b.reshape(1, -1))
        out.append((wp.astype(jnp.bfloat16), bp))
    return tuple(out)


def init_params(key, num_node_features):
    dims = [(num_node_features, 64), (64, 128), (128, 64), (64, 1)]
    params = []
    for fin, fout in dims:
        kw, key = jax.random.split(key)
        scale = jnp.sqrt(6.0 / (fin + fout)).astype(jnp.float32)   # Glorot-style
        w = jax.random.uniform(kw, (fin, fout), jnp.float32, -scale, scale)
        b = jnp.zeros((1, fout), jnp.float32)
        params.append((w, b))
    return tuple(params)


# ------------------------------- forward pass -------------------------------

def enhanced_gnn_forward(x, edge_index, edge_weight, batch, params, num_graphs,
                         *, force_tiled=False):
    """Eval-mode EnhancedGNN forward.  Returns [num_graphs, 1] f32."""
    num_nodes, f0 = x.shape
    vmem_limit = _vmem_limit_bytes()
    gp = _round_up(max(num_graphs, 1), 8)

    if force_tiled:
        n_pad = _round_up(max(num_nodes, 1), 256)
        use_fused = False
    else:
        n_pad = _round_up(max(num_nodes, 1), LANES)
        use_fused = _fused_fits(n_pad, gp, vmem_limit)
        if not use_fused:
            n_pad = _round_up(n_pad, 256)

    # A_hat constructed directly in bf16 (kernel input dtype) -- no extra cast pass.
    a_bf = gcn_norm_dense(edge_index, edge_weight, num_nodes, n_pad,
                          dtype=jnp.bfloat16)
    x_p = jnp.zeros((n_pad, LANES), jnp.bfloat16).at[:num_nodes, :f0].set(
        x.astype(jnp.bfloat16))
    pool = mean_pool_matrix(batch, gp, n_pad)                        # f32 [Gp, Np]
    wp = _pad_params(params)

    if use_fused:
        out = _fused_forward(a_bf, x_p, wp, pool, vmem_limit_bytes=vmem_limit)
    else:
        tm, tk = _choose_tiles(n_pad, vmem_limit)
        out = _tiled_forward(a_bf, x_p, wp, pool, tm=tm, tk=tk,
                             vmem_limit_bytes=vmem_limit)
    return out[:num_graphs, :1]


def reference_forward(a, x, params, pool):
    """Pure-JAX f32 reference of the original module (eval mode: dropout = identity)."""
    (w1, b1), (w2, b2), (w3, b3), (w4, b4) = params
    h = jnp.maximum(a @ (x @ w1) + b1, 0.0)
    h = jnp.maximum(a @ (h @ w2) + b2, 0.0)
    h = jnp.maximum(a @ (h @ w3) + b3, 0.0)
    h = a @ (h @ w4) + b4
    return pool @ h


if __name__ == "__main__":
    key = jax.random.PRNGKey(0)

    num_nodes = 16
    num_node_features = 16
    num_graphs = 2
    num_edges = 32

    k_x, k_src, k_dst, k_w, k_p = jax.random.split(key, 5)

    x = jax.random.normal(k_x, (num_nodes, num_node_features), jnp.float32)
    src = jax.random.randint(k_src, (num_edges,), 0, num_nodes)
    dst = jax.random.randint(k_dst, (num_edges,), 0, num_nodes)
    edge_index = jnp.stack([src, dst], axis=0)                      # [2, E]
    edge_weight = jax.random.uniform(k_w, (num_edges,), jnp.float32, 0.1, 1.0)
    batch = jnp.concatenate([
        jnp.zeros((num_nodes // 2,), jnp.int32),
        jnp.ones((num_nodes - num_nodes // 2,), jnp.int32),
    ])                                                              # node -> graph id

    params = init_params(k_p, num_node_features)

    # Pure-f32 reference (independent dense A / pool in f32).
    a_f32 = gcn_norm_dense(edge_index, edge_weight, num_nodes, num_nodes,
                           dtype=jnp.float32)
    pool_f32 = mean_pool_matrix(batch, num_graphs, num_nodes)
    ref = reference_forward(a_f32, x, params, pool_f32)

    # Path 1: fused resident-A kernel (auto-selected for small graphs).
    out = enhanced_gnn_forward(x, edge_index, edge_weight, batch, params, num_graphs)
    jax.block_until_ready(out)
    assert out.shape == (num_graphs, 1) and out.dtype == jnp.float32
    assert bool(jnp.all(jnp.isfinite(out)))
    # bf16-operand / f32-accumulation numerics: compare loosely against f32 reference.
    assert bool(jnp.allclose(out, ref, rtol=0.1, atol=0.1)), (out, ref)

    # Path 2: row/K-tiled per-layer kernels (used for large graphs) -- force-test here.
    out_t = enhanced_gnn_forward(x, edge_index, edge_weight, batch, params,
                                 num_graphs, force_tiled=True)
    jax.block_until_ready(out_t)
    assert out_t.shape == (num_graphs, 1)
    assert bool(jnp.all(jnp.isfinite(out_t)))
    assert bool(jnp.allclose(out_t, ref, rtol=0.1, atol=0.1)), (out_t, ref)

    print("KERNEL_OK")
</pallas_src>

<mosaic_0001>
module attributes {stable_mosaic.version = 11 : i64} {
  func.func @_fused_gnn_kernel(%arg0: memref<128x128xbf16, #tpu.memory_space<vmem>>, %arg1: memref<128x128xbf16, #tpu.memory_space<vmem>>, %arg2: memref<128x128xbf16, #tpu.memory_space<vmem>>, %arg3: memref<1x128xf32, #tpu.memory_space<vmem>>, %arg4: memref<128x128xbf16, #tpu.memory_space<vmem>>, %arg5: memref<1x128xf32, #tpu.memory_space<vmem>>, %arg6: memref<128x128xbf16, #tpu.memory_space<vmem>>, %arg7: memref<1x128xf32, #tpu.memory_space<vmem>>, %arg8: memref<128x128xbf16, #tpu.memory_space<vmem>>, %arg9: memref<1x128xf32, #tpu.memory_space<vmem>>, %arg10: memref<8x128xf32, #tpu.memory_space<vmem>>, %arg11: memref<8x128xf32, #tpu.memory_space<vmem>>) attributes {dimension_semantics = [], scalar_prefetch = 0 : i64, scratch_operands = 0 : i64, tpu.core_type = #tpu.core_type<tc>} {
    %c0 = arith.constant 0 : index
    %c0_0 = arith.constant 0 : index
    %0 = vector.load %arg0[%c0, %c0_0] : memref<128x128xbf16, #tpu.memory_space<vmem>>, vector<128x128xbf16>
    %c0_1 = arith.constant 0 : index
    %c0_2 = arith.constant 0 : index
    %1 = vector.load %arg1[%c0_1, %c0_2] : memref<128x128xbf16, #tpu.memory_space<vmem>>, vector<128x128xbf16>
    %c0_3 = arith.constant 0 : index
    %c0_4 = arith.constant 0 : index
    %2 = vector.load %arg2[%c0_3, %c0_4] : memref<128x128xbf16, #tpu.memory_space<vmem>>, vector<128x128xbf16>
    %cst = arith.constant dense<0.000000e+00> : vector<128x128xf32>
    %3 = tpu.matmul %1, %2, %cst {dimension_numbers = #tpu.dot_dimension_numbers<[1], [0], [0], [1], [0, 0, 1, 1], [], []>} : vector<128x128xbf16>, vector<128x128xbf16>, vector<128x128xf32> -> vector<128x128xf32>
    %4 = arith.truncf %3 : vector<128x128xf32> to vector<128x128xbf16>
    %cst_5 = arith.constant dense<0.000000e+00> : vector<128x128xf32>
    %5 = tpu.matmul %0, %4, %cst_5 {dimension_numbers = #tpu.dot_dimension_numbers<[1], [0], [0], [1], [0, 0, 1, 1], [], []>} : vector<128x128xbf16>, vector<128x128xbf16>, vector<128x128xf32> -> vector<128x128xf32>
    %c0_6 = arith.constant 0 : index
    %c0_7 = arith.constant 0 : index
    %6 = vector.load %arg3[%c0_6, %c0_7] : memref<1x128xf32, #tpu.memory_space<vmem>>, vector<1x128xf32>
    %7 = vector.broadcast %6 : vector<1x128xf32> to vector<128x128xf32>
    %8 = arith.addf %5, %7 : vector<128x128xf32>
    %cst_8 = arith.constant 0.000000e+00 : f32
    %9 = vector.broadcast %cst_8 : f32 to vector<128x128xf32>
    %10 = arith.maximumf %8, %9 : vector<128x128xf32>
    %11 = arith.truncf %10 : vector<128x128xf32> to vector<128x128xbf16>
    %c0_9 = arith.constant 0 : index
    %c0_10 = arith.constant 0 : index
    %12 = vector.load %arg4[%c0_9, %c0_10] : memref<128x128xbf16, #tpu.memory_space<vmem>>, vector<128x128xbf16>
    %cst_11 = arith.constant dense<0.000000e+00> : vector<128x128xf32>
    %13 = tpu.matmul %11, %12, %cst_11 {dimension_numbers = #tpu.dot_dimension_numbers<[1], [0], [0], [1], [0, 0, 1, 1], [], []>} : vector<128x128xbf16>, vector<128x128xbf16>, vector<128x128xf32> -> vector<128x128xf32>
    %14 = arith.truncf %13 : vector<128x128xf32> to vector<128x128xbf16>
    %cst_12 = arith.constant dense<0.000000e+00> : vector<128x128xf32>
    %15 = tpu.matmul %0, %14, %cst_12 {dimension_numbers = #tpu.dot_dimension_numbers<[1], [0], [0], [1], [0, 0, 1, 1], [], []>} : vector<128x128xbf16>, vector<128x128xbf16>, vector<128x128xf32> -> vector<128x128xf32>
    %c0_13 = arith.constant 0 : index
    %c0_14 = arith.constant 0 : index
    %16 = vector.load %arg5[%c0_13, %c0_14] : memref<1x128xf32, #tpu.memory_space<vmem>>, vector<1x128xf32>
    %17 = vector.broadcast %16 : vector<1x128xf32> to vector<128x128xf32>
    %18 = arith.addf %15, %17 : vector<128x128xf32>
    %cst_15 = arith.constant 0.000000e+00 : f32
    %19 = vector.broadcast %cst_15 : f32 to vector<128x128xf32>
    %20 = arith.maximumf %18, %19 : vector<128x128xf32>
    %21 = arith.truncf %20 : vector<128x128xf32> to vector<128x128xbf16>
    %c0_16 = arith.constant 0 : index
    %c0_17 = arith.constant 0 : index
    %22 = vector.load %arg6[%c0_16, %c0_17] : memref<128x128xbf16, #tpu.memory_space<vmem>>, vector<128x128xbf16>
    %cst_18 = arith.constant dense<0.000000e+00> : vector<128x128xf32>
    %23 = tpu.matmul %21, %22, %cst_18 {dimension_numbers = #tpu.dot_dimension_numbers<[1], [0], [0], [1], [0, 0, 1, 1], [], []>} : vector<128x128xbf16>, vector<128x128xbf16>, vector<128x128xf32> -> vector<128x128xf32>
    %24 = arith.truncf %23 : vector<128x128xf32> to vector<128x128xbf16>
    %cst_19 = arith.constant dense<0.000000e+00> : vector<128x128xf32>
    %25 = tpu.matmul %0, %24, %cst_19 {dimension_numbers = #tpu.dot_dimension_numbers<[1], [0], [0], [1], [0, 0, 1, 1], [], []>} : vector<128x128xbf16>, vector<128x128xbf16>, vector<128x128xf32> -> vector<128x128xf32>
    %c0_20 = arith.constant 0 : index
    %c0_21 = arith.constant 0 : index
    %26 = vector.load %arg7[%c0_20, %c0_21] : memref<1x128xf32, #tpu.memory_space<vmem>>, vector<1x128xf32>
    %27 = vector.broadcast %26 : vector<1x128xf32> to vector<128x128xf32>
    %28 = arith.addf %25, %27 : vector<128x128xf32>
    %cst_22 = arith.constant 0.000000e+00 : f32
    %29 = vector.broadcast %cst_22 : f32 to vector<128x128xf32>
    %30 = arith.maximumf %28, %29 : vector<128x128xf32>
    %31 = arith.truncf %30 : vector<128x128xf32> to vector<128x128xbf16>
    %c0_23 = arith.constant 0 : index
    %c0_24 = arith.constant 0 : index
    %32 = vector.load %arg8[%c0_23, %c0_24] : memref<128x128xbf16, #tpu.memory_space<vmem>>, vector<128x128xbf16>
    %cst_25 = arith.constant dense<0.000000e+00> : vector<128x128xf32>
    %33 = tpu.matmul %31, %32, %cst_25 {dimension_numbers = #tpu.dot_dimension_numbers<[1], [0], [0], [1], [0, 0, 1, 1], [], []>} : vector<128x128xbf16>, vector<128x128xbf16>, vector<128x128xf32> -> vector<128x128xf32>
    %34 = arith.truncf %33 : vector<128x128xf32> to vector<128x128xbf16>
    %cst_26 = arith.constant dense<0.000000e+00> : vector<128x128xf32>
    %35 = tpu.matmul %0, %34, %cst_26 {dimension_numbers = #tpu.dot_dimension_numbers<[1], [0], [0], [1], [0, 0, 1, 1], [], []>} : vector<128x128xbf16>, vector<128x128xbf16>, vector<128x128xf32> -> vector<128x128xf32>
    %c0_27 = arith.constant 0 : index
    %c0_28 = arith.constant 0 : index
    %36 = vector.load %arg9[%c0_27, %c0_28] : memref<1x128xf32, #tpu.memory_space<vmem>>, vector<1x128xf32>
    %37 = vector.broadcast %36 : vector<1x128xf32> to vector<128x128xf32>
    %38 = arith.addf %35, %37 : vector<128x128xf32>
    %c0_29 = arith.constant 0 : index
    %c0_30 = arith.constant 0 : index
    %39 = vector.load %arg10[%c0_29, %c0_30] : memref<8x128xf32, #tpu.memory_space<vmem>>, vector<8x128xf32>
    %cst_31 = arith.constant dense<0.000000e+00> : vector<8x128xf32>
    %40 = tpu.matmul %39, %38, %cst_31 {dimension_numbers = #tpu.dot_dimension_numbers<[1], [0], [0], [1], [0, 0, 1, 1], [], []>} : vector<8x128xf32>, vector<128x128xf32>, vector<8x128xf32> -> vector<8x128xf32>
    %c0_32 = arith.constant 0 : index
    %c0_33 = arith.constant 0 : index
    %41 = vector.load %arg11[%c0_32, %c0_33] : memref<8x128xf32, #tpu.memory_space<vmem>>, vector<8x128xf32>
    tpu.vector_store %arg11[%c0_32, %c0_33], %40 {strides = array<i32>} : memref<8x128xf32, #tpu.memory_space<vmem>>, vector<8x128xf32>,
    return
  }
}

</mosaic_0001>

<bundles_post_ra>
// kernel: tpu_custom_call.1
= control target key start
LH: loop header
LB: loop body
LE: loop exit
PB: predicated region body
PF: predicated region fallthrough
CT: control target
= control target key end

     0   :  { %16 = vsyncpa [#allocation3], 0  ;;  %s2391_s0 = inlined_call_operand.hbm [shape: bf16[128,128], index: 0, kind: input, shape index: {}]   ;;  %s2392_s1 = inlined_call_operand.hbm [shape: bf16[128,128], index: 1, kind: input, shape index: {}]   ;;  %s2393_s2 = inlined_call_operand.hbm [shape: bf16[128,128], index: 2, kind: input, shape index: {}]   ;;  %s2394_s3 = inlined_call_operand.vmem [shape: f32[1,128], index: 3, kind: input, shape index: {}]   ;;  %s2395_s4 = inlined_call_operand.hbm [shape: bf16[128,128], index: 4, kind: input, shape index: {}]   ;;  %s2396_s5 = inlined_call_operand.vmem [shape: f32[1,128], index: 5, kind: input, shape index: {}]   ;;  %s2397_s6 = inlined_call_operand.hbm [shape: bf16[128,128], index: 6, kind: input, shape index: {}]   ;;  %s2398_s7 = inlined_call_operand.vmem [shape: f32[1,128], index: 7, kind: input, shape index: {}]   ;;  %s2399_s8 = inlined_call_operand.hbm [shape: bf16[128,128], index: 8, kind: input, shape index: {}]   ;;  %s2400_s9 = inlined_call_operand.vmem [shape: f32[1,128], index: 9, kind: input, shape index: {}]   ;;  %s2401_s10 = inlined_call_operand.vmem [shape: f32[8,128], index: 10, kind: input, shape index: {}]   ;;  %s2402_s11 = inlined_call_operand.hbm [shape: f32[8,128], index: 11, kind: output, shape index: {}]  }
   0x1   :  { %17 = vsyncpa [#allocation6], 0 }
   0x2   :  { %18 = vsyncpa [#allocation9], 0 }
   0x3   :  { %19 = vsyncpa [#allocation12], 0 }
   0x4   :  { %20 = vsyncpa [#allocation4], 0  ;;  %s2201_s17 = smov [#allocation5]   ;;  %s2202_s19 = smov [#allocation8]  }
   0x5   :  { %s38_s18 = sshll.u32 %s2201_s17, 4  ;;  %s64_s20 = sshll.u32 %s2202_s19, 4  ;;  %s39_s18 = int_to_ptr.vmem [resolvable:$true] %s38_s18  ;;  %s65_s20 = int_to_ptr.vmem [resolvable:$true] %s64_s20 }
   0x6   :  { %s2059_s21 = scalar_lea.vmem %s39_s18, 1024  ;;  %p2064_p1 = scmp.lt.s32.totalorder %s39_s18, %s39_s18 }
   0x7   :  { %p2060_p0 = scmp.ne.s32.totalorder %s39_s18, %s2059_s21  ;;  %p2065_p2 = scmp.lt.s32.totalorder %s2059_s21, %s2059_s21 }
   0x9   :  { %p2066_p3 = por %p2065_p2, %p2064_p1 }
   0xb   :  { %p2067_p4 = pnand %p2066_p3, %p2060_p0 }
   0xd   :  { %2070 = shalt.err (!%p2067_p4)
}
   0xe   :  { %s2203_s22 = smov 64   ;;  %s2204_s23 = smov 4  }
   0xf   :  { %44 = dma.hbm_to_vmem [thread:$0]  %s2392_s1, 1024, %s39_s18, [#allocation6], %s2203_s22, %s2203_s22, %s2204_s23  }
  0x10   :  { %s2079_s26 = scalar_lea.vmem %s65_s20, 1024  ;;  %p2084_p6 = scmp.lt.s32.totalorder %s65_s20, %s65_s20 }
  0x11   :  { %p2080_p5 = scmp.ne.s32.totalorder %s65_s20, %s2079_s26  ;;  %p2085_p7 = scmp.lt.s32.totalorder %s2079_s26, %s2079_s26 }
  0x13   :  { %p2086_p8 = por %p2085_p7, %p2084_p6 }
  0x15   :  { %p2087_p9 = pnand %p2086_p8, %p2080_p5 }
  0x17   :  { %2090 = shalt.err (!%p2087_p9)
}
  0x18   :  { %70 = dma.hbm_to_vmem [thread:$0]  %s2395_s4, 1024, %s65_s20, [#allocation9], %s2203_s22, %s2203_s22, %s2204_s23  }
  0x19   :  { %s2205_s29 = smov [#allocation2]   ;;  %s2206_s12 = smov [#allocation7]  }
  0x1a   :  { %s26_s30 = sshll.u32 %s2205_s29, 4  ;;  %s50_s13 = sshll.u32 %s2206_s12, 4  ;;  %s27_s30 = int_to_ptr.vmem [resolvable:$true] %s26_s30  ;;  %s51_s13 = int_to_ptr.vmem [resolvable:$true] %s50_s13 }
  0x1b   :  { %s2099_s1 = scalar_lea.vmem %s27_s30, 1024  ;;  %p2104_p11 = scmp.lt.s32.totalorder %s27_s30, %s27_s30 }
  0x1c   :  { %p2100_p10 = scmp.ne.s32.totalorder %s27_s30, %s2099_s1  ;;  %p2105_p12 = scmp.lt.s32.totalorder %s2099_s1, %s2099_s1 }
  0x1e   :  { %p2106_p13 = por %p2105_p12, %p2104_p11 }
  0x20   :  { %p2107_p0 = pnand %p2106_p13, %p2100_p10 }
  0x22   :  { %2110 = shalt.err (!%p2107_p0)
}
  0x23   :  { %32 = dma.hbm_to_vmem [thread:$0]  %s2391_s0, 1024, %s27_s30, [#allocation3], %s2203_s22, %s2203_s22, %s2204_s23  }
  0x24   :  { %s2119_s4 = scalar_lea.vmem %s51_s13, 1024  ;;  %p2124_p2 = scmp.lt.s32.totalorder %s51_s13, %s51_s13 }
  0x25   :  { %p2120_p1 = scmp.ne.s32.totalorder %s51_s13, %s2119_s4  ;;  %p2125_p3 = scmp.lt.s32.totalorder %s2119_s4, %s2119_s4 }
  0x27   :  { %p2126_p4 = por %p2125_p3, %p2124_p2 }
  0x29   :  { %p2127_p5 = pnand %p2126_p4, %p2120_p1 }
  0x2b   :  { %2130 = shalt.err (!%p2127_p5)
}
  0x2c   :  { %56 = dma.hbm_to_vmem [thread:$0]  %s2393_s2, 1024, %s51_s13, [#allocation6], %s2203_s22, %s2203_s22, %s2204_s23  }
  0x2d   :  { %s2207_s18 = smov [#allocation10]   ;;  %s2208_s20 = smov [#allocation11]  }
  0x2e   :  { %s78_s19 = sshll.u32 %s2207_s18, 4  ;;  %s92_s21 = sshll.u32 %s2208_s20, 4  ;;  %s79_s19 = int_to_ptr.vmem [resolvable:$true] %s78_s19  ;;  %s93_s21 = int_to_ptr.vmem [resolvable:$true] %s92_s21 }
  0x2f   :  { %s2139_s0 = scalar_lea.vmem %s79_s19, 1024  ;;  %p2144_p7 = scmp.lt.s32.totalorder %s79_s19, %s79_s19 }
  0x30   :  { %p2140_p6 = scmp.ne.s32.totalorder %s79_s19, %s2139_s0  ;;  %p2145_p8 = scmp.lt.s32.totalorder %s2139_s0, %s2139_s0 }
  0x32   :  { %p2146_p9 = por %p2145_p8, %p2144_p7 }
  0x34   :  { %p2147_p10 = pnand %p2146_p9, %p2140_p6 }
  0x36   :  { %2150 = shalt.err (!%p2147_p10)
}
  0x37   :  { %84 = dma.hbm_to_vmem [thread:$0]  %s2397_s6, 1024, %s79_s19, [#allocation9], %s2203_s22, %s2203_s22, %s2204_s23  }
  0x38   :  { %s2159_s2 = scalar_lea.vmem %s93_s21, 1024  ;;  %p2164_p12 = scmp.lt.s32.totalorder %s93_s21, %s93_s21 }
  0x39   :  { %p2160_p11 = scmp.ne.s32.totalorder %s93_s21, %s2159_s2  ;;  %p2165_p13 = scmp.lt.s32.totalorder %s2159_s2, %s2159_s2 }
  0x3b   :  { %p2166_p0 = por %p2165_p13, %p2164_p12 }
  0x3d   :  { %p2167_p1 = pnand %p2166_p0, %p2160_p11 }
  0x3f   :  { %2170 = shalt.err (!%p2167_p1)
}
  0x40   :  { %98 = dma.hbm_to_vmem [thread:$0]  %s2399_s8, 1024, %s93_s21, [#allocation12], %s2203_s22, %s2203_s22, %s2204_s23  }
  0x41   :  { %2191 = dma.done.wait [#allocation3], 1024  }
  0x42   :  { %2192 = vsyncadd [#allocation3], 4294966272 }
  0x43   :  { %2193 = dma.done.wait [#allocation6], 2048  }
  0x44   :  { %2194 = vsyncadd [#allocation6], 4294965248 }
  0x45   :  { %2195 = dma.done.wait [#allocation9], 2048  }
  0x46   :  { %2196 = vsyncadd [#allocation9], 4294965248 }
  0x47   :  { %2197 = dma.done.wait [#allocation12], 1024  }
  0x48   :  { %2198 = vsyncadd [#allocation12], 4294966272  ;;  %v2003_v0 = vld [vmem:[#allocation7 + $0x38] sm:$0xff]   ;;  %v2004_v1 = vld [vmem:[#allocation7 + $0x30] sm:$0xff]   ;;  %vm2210_vm0 = vmmov 0   ;;  %s2211_s30 = smov [#allocation13]  }
  0x49   :  { %1701 = vmatprep.subr.bf16.mxu0 %v2003_v0  ;;  %v2005_v2 = vld [vmem:[#allocation7 + $0x28] sm:$0xff]   ;;  %v2006_v3 = vld [vmem:[#allocation7 + $0x20] sm:$0xff]   ;;  %v2007_v5 = vld [vmem:[#allocation7 + $0x18] sm:$0xff]   ;;  %s1492_s12 = sshll.u32 %s2211_s30, 4  ;;  %s1493_s12 = int_to_ptr.vmem [resolvable:$true] %s1492_s12 }
  0x4a   :  { %1702 = vmatpush3.bf16.msra.mxu0 %v2003_v0  ;;  %v2011_v4 = vld [vmem:[#allocation5] sm:$0xff]   ;;  %v2008_v6 = vld [vmem:[#allocation7 + $0x10] sm:$0xff]   ;;  %v2009_v7 = vld [vmem:[#allocation7 + $0x8] sm:$0xff]   ;;  %s2171_s13 = scalar_lea.vmem %s1493_s12, 128  ;;  %p2176_p3 = scmp.lt.s32.totalorder %s1493_s12, %s1493_s12 }
  0x4b   :  { %1703 = vmatprep.subr.bf16.mxu0 %v2004_v1  ;;  %1717 = vmatprep.mubr.bf16.mxu0 %v2011_v4  ;;  %v2010_v8 = vld [vmem:[#allocation7] sm:$0xff]   ;;  %v2012_v9 = vld [vmem:[#allocation5 + $0x8] sm:$0xff]   ;;  %v2013_v10 = vld [vmem:[#allocation5 + $0x10] sm:$0xff]   ;;  %p2172_p2 = scmp.ne.s32.totalorder %s1493_s12, %s2171_s13  ;;  %p2177_p4 = scmp.lt.s32.totalorder %s2171_s13, %s2171_s13 }
  0x4c   :  { %v2014_v11 = vld [vmem:[#allocation5 + $0x18] sm:$0xff]   ;;  %v2015_v12 = vld [vmem:[#allocation5 + $0x20] sm:$0xff]   ;;  %v2016_v13 = vld [vmem:[#allocation5 + $0x28] sm:$0xff]  }
  0x4d   :  { %v2017_v14 = vld [vmem:[#allocation5 + $0x30] sm:$0xff]   ;;  %v2018_v15 = vld [vmem:[#allocation5 + $0x38] sm:$0xff]   ;;  %v2308_v16 = vld [vmem:[#allocation2] sm:$0xff]   ;;  %p2178_p5 = por %p2177_p4, %p2176_p3 }
  0x4e   :  { %1704 = vmatpush3.bf16.msra.mxu0 %v2004_v1  ;;  %1749 = vmatprep.mubr.bf16.mxu1 %v2308_v16  ;;  %v2027_v17 = vld [vmem:[#allocation8 + $0x38] sm:$0xff]   ;;  %v2028_v18 = vld [vmem:[#allocation8 + $0x30] sm:$0xff]   ;;  %v2029_v19 = vld [vmem:[#allocation8 + $0x28] sm:$0xff]  }
  0x4f   :  { %1705 = vmatprep.subr.bf16.mxu0 %v2005_v2  ;;  %v2030_v20 = vld [vmem:[#allocation8 + $0x20] sm:$0xff]   ;;  %v2031_v21 = vld [vmem:[#allocation8 + $0x18] sm:$0xff]   ;;  %v2311_v46 = vld [vmem:[#allocation2 + $0x8] sm:$0xff]   ;;  %p2179_p6 = pnand %p2178_p5, %p2172_p2 }
  0x50   :  { %v2313_v47 = vld [vmem:[#allocation2 + $0x10] sm:$0xff]   ;;  %v2317_v48 = vld [vmem:[#allocation2 + $0x18] sm:$0xff]   ;;  %v2319_v49 = vld [vmem:[#allocation2 + $0x20] sm:$0xff]  }
  0x51   :  { %v2323_v50 = vld [vmem:[#allocation2 + $0x28] sm:$0xff]   ;;  %v2325_v51 = vld [vmem:[#allocation2 + $0x30] sm:$0xff]   ;;  %v2329_v52 = vld [vmem:[#allocation2 + $0x38] sm:$0xff]  }
  0x52   :  { %1706 = vmatpush3.bf16.msra.mxu0 %v2005_v2  ;;  %v2032_v53 = vld [vmem:[#allocation8 + $0x10] sm:$0xff]   ;;  %v2033_v54 = vld [vmem:[#allocation8 + $0x8] sm:$0xff]   ;;  %v2034_v55 = vld [vmem:[#allocation8] sm:$0xff]  }
  0x53   :  { %1707 = vmatprep.subr.bf16.mxu0 %v2006_v3  ;;  %v1520_v58 = vld [vmem:[%s2394_s3] ss:$0 sm:$0xff] }
  0x56   :  { %1708 = vmatpush3.bf16.msra.mxu0 %v2006_v3 }
  0x57   :  { %1709 = vmatprep.subr.bf16.mxu0 %v2007_v5 }
  0x5a   :  { %1710 = vmatpush3.bf16.msra.mxu0 %v2007_v5 }
  0x5b   :  { %1711 = vmatprep.subr.bf16.mxu0 %v2008_v6 }
  0x5e   :  { %1712 = vmatpush3.bf16.msra.mxu0 %v2008_v6 }
  0x5f   :  { %1713 = vmatprep.subr.bf16.mxu0 %v2009_v7 }
  0x62   :  { %1714 = vmatpush3.bf16.msra.mxu0 %v2009_v7 }
  0x63   :  { %1715 = vmatprep.subr.bf16.mxu0 %v2010_v8 }
  0x66   :  { %1716 = vmatpush3.bf16.msra.mxu0 %v2010_v8 }
  0x67   :  { %1765 = vmatprep.subr.bf16.mxu0 %v2027_v17 }
  0x69   :  { %1718 = vmatmul.mubr.bf16.vlgmr.msra.gmra.mxu0 %v2012_v9 }
  0x6a   :  { %1721 = vmatprep.mubr.bf16.mxu0 %v2013_v10  ;;  %1766 = vmatpush3.bf16.msra.mxu0 %v2027_v17 }
  0x6b   :  { %1767 = vmatprep.subr.bf16.mxu0 %v2028_v18 }
  0x6e   :  { %1768 = vmatpush3.bf16.msra.mxu0 %v2028_v18 }
  0x6f   :  { %1769 = vmatprep.subr.bf16.mxu0 %v2029_v19 }
  0x71   :  { %1722 = vmatmul.mubr.bf16.gmra.mxu0 %v2014_v11 }
  0x72   :  { %1725 = vmatprep.mubr.bf16.mxu0 %v2015_v12  ;;  %1770 = vmatpush3.bf16.msra.mxu0 %v2029_v19 }
  0x73   :  { %1771 = vmatprep.subr.bf16.mxu0 %v2030_v20 }
  0x76   :  { %1772 = vmatpush3.bf16.msra.mxu0 %v2030_v20 }
  0x77   :  { %1773 = vmatprep.subr.bf16.mxu0 %v2031_v21 }
  0x79   :  { %1726 = vmatmul.mubr.bf16.gmra.mxu0 %v2016_v13 }
  0x7a   :  { %1729 = vmatprep.mubr.bf16.mxu0 %v2017_v14  ;;  %1774 = vmatpush3.bf16.msra.mxu0 %v2031_v21 }
  0x7b   :  { %1775 = vmatprep.subr.bf16.mxu0 %v2032_v53 }
  0x7e   :  { %1776 = vmatpush3.bf16.msra.mxu0 %v2032_v53 }
  0x7f   :  { %1777 = vmatprep.subr.bf16.mxu0 %v2033_v54 }
  0x81   :  { %1730 = vmatmul.mubr.bf16.gmra.mxu0 %v2018_v15 }
  0x82   :  { %1778 = vmatpush3.bf16.msra.mxu0 %v2033_v54 }
  0x83   :  { %1779 = vmatprep.subr.bf16.mxu0 %v2034_v55 }
  0x86   :  { %1780 = vmatpush3.bf16.msra.mxu0 %v2034_v55 }
 0x129   :  { %v1719_v22 = vpop.f32.mrf.mxu0 }
 0x12b   :  { %v300_v23 = vpop.f32.mrf.mxu0 }
 0x12d   :  { %v1720_v24 = vpop.f32.mrf.mxu0 }
 0x12e   :  { %v364_v44 = vpack.c.bf16 %v1720_v24, %v1719_v22 }
 0x12f   :  { %v303_v25 = vpop.f32.mrf.mxu0 }
 0x130   :  { %v363_v45 = vpack.c.bf16 %v303_v25, %v300_v23 }
 0x131   :  { %v1723_v26 = vpop.f32.mrf.mxu0 }
 0x133   :  { %v316_v27 = vpop.f32.mrf.mxu0 }
 0x135   :  { %v1724_v28 = vpop.f32.mrf.mxu0 }
 0x136   :  { %v366_v42 = vpack.c.bf16 %v1724_v28, %v1723_v26 }
 0x137   :  { %v319_v29 = vpop.f32.mrf.mxu0 }
 0x138   :  { %v365_v43 = vpack.c.bf16 %v319_v29, %v316_v27 }
 0x139   :  { %v1727_v30 = vpop.f32.mrf.mxu0 }
 0x13b   :  { %v332_v31 = vpop.f32.mrf.mxu0 }
 0x13d   :  { %v1728_v32 = vpop.f32.mrf.mxu0 }
 0x13e   :  { %v368_v40 = vpack.c.bf16 %v1728_v32, %v1727_v30 }
 0x13f   :  { %v335_v33 = vpop.f32.mrf.mxu0 }
 0x140   :  { %v367_v41 = vpack.c.bf16 %v335_v33, %v332_v31 }
 0x141   :  { %v1731_v34 = vpop.f32.mrf.mxu0 }
 0x143   :  { %v348_v35 = vpop.f32.mrf.mxu0 }
 0x145   :  { %v1732_v36 = vpop.f32.mrf.mxu0 }
 0x146   :  { %v370_v37 = vpack.c.bf16 %v1732_v36, %v1731_v34 }
 0x147   :  { %v351_v38 = vpop.f32.mrf.mxu0 }
 0x148   :  { %v369_v39 = vpack.c.bf16 %v351_v38, %v348_v35  ;;  %1733 = vmatprep.subr.bf16.mxu1 %v370_v37 }
 0x149   :  { %1734 = vmatpush3.bf16.msra.mxu1 %v370_v37 }
 0x14a   :  { %1735 = vmatprep.subr.bf16.mxu1 %v369_v39 }
 0x14d   :  { %1736 = vmatpush3.bf16.msra.mxu1 %v369_v39 }
 0x14e   :  { %1737 = vmatprep.subr.bf16.mxu1 %v368_v40 }
 0x151   :  { %1738 = vmatpush3.bf16.msra.mxu1 %v368_v40 }
 0x152   :  { %1739 = vmatprep.subr.bf16.mxu1 %v367_v41 }
 0x155   :  { %1740 = vmatpush3.bf16.msra.mxu1 %v367_v41 }
 0x156   :  { %1741 = vmatprep.subr.bf16.mxu1 %v366_v42 }
 0x159   :  { %1742 = vmatpush3.bf16.msra.mxu1 %v366_v42 }
 0x15a   :  { %1743 = vmatprep.subr.bf16.mxu1 %v365_v43 }
 0x15d   :  { %1744 = vmatpush3.bf16.msra.mxu1 %v365_v43 }
 0x15e   :  { %1745 = vmatprep.subr.bf16.mxu1 %v364_v44 }
 0x161   :  { %1746 = vmatpush3.bf16.msra.mxu1 %v364_v44 }
 0x162   :  { %1747 = vmatprep.subr.bf16.mxu1 %v363_v45 }
 0x165   :  { %1748 = vmatpush3.bf16.msra.mxu1 %v363_v45 }
 0x168   :  { %1750 = vmatmul.mubr.bf16.vlgmr.msra.gmra.mxu1 %v2311_v46 }
 0x169   :  { %1753 = vmatprep.mubr.bf16.mxu1 %v2313_v47 }
 0x170   :  { %1754 = vmatmul.mubr.bf16.gmra.mxu1 %v2317_v48 }
 0x171   :  { %1757 = vmatprep.mubr.bf16.mxu1 %v2319_v49 }
 0x178   :  { %1758 = vmatmul.mubr.bf16.gmra.mxu1 %v2323_v50 }
 0x179   :  { %1761 = vmatprep.mubr.bf16.mxu1 %v2325_v51 }
 0x180   :  { %1762 = vmatmul.mubr.bf16.gmra.mxu1 %v2329_v52 }
 0x181   :  { %1813 = vmatprep.mubr.bf16.mxu1 %v2308_v16 }
 0x228   :  { %v1751_v56 = vpop.f32.mrf.mxu1 }
 0x229   :  { %v469_v62 = vadd.f32 %v1751_v56, %v1520_v58 }
 0x22a   :  { %v460_v57 = vpop.f32.mrf.mxu1 }
 0x22b   :  { %v461_v60 = vadd.f32 %v1520_v58, %v460_v57  ;;  %v525_v5 = vmax.f32 %v469_v62, 0.0  ;;  %v2035_v57 = vld [vmem:[#allocation10 + $0x38] sm:$0xff]  }
 0x22c   :  { %v1752_v59 = vpop.f32.mrf.mxu1  ;;  %1829 = vmatprep.subr.bf16.mxu0 %v2035_v57 }
 0x22d   :  { %v472_v61 = vadd.f32 %v1752_v59, %v1520_v58  ;;  %v523_v3 = vmax.f32 %v461_v60, 0.0  ;;  %v2036_v59 = vld [vmem:[#allocation10 + $0x30] sm:$0xff]   ;;  %v2037_v60 = vld [vmem:[#allocation10 + $0x28] sm:$0xff]  }
 0x22e   :  { %v463_v63 = vpop.f32.mrf.mxu1 }
 0x22f   :  { %v464_v0 = vadd.f32 %v1520_v58, %v463_v63  ;;  %v526_v1 = vmax.f32 %v472_v61, 0.0  ;;  %v2038_v61 = vld [vmem:[#allocation10 + $0x20] sm:$0xff]  }
 0x230   :  { %v1755_v2 = vpop.f32.mrf.mxu1 }
 0x231   :  { %v524_v4 = vmax.f32 %v464_v0, 0.0  ;;  %v540_v8 = vpack.c.bf16 %v526_v1, %v525_v5  ;;  %v485_v12 = vadd.f32 %v1755_v2, %v1520_v58 }
 0x232   :  { %v476_v6 = vpop.f32.mrf.mxu1 }
 0x233   :  { %v539_v7 = vpack.c.bf16 %v524_v4, %v523_v3  ;;  %v477_v10 = vadd.f32 %v1520_v58, %v476_v6  ;;  %v529_v20 = vmax.f32 %v485_v12, 0.0 }
 0x234   :  { %v1756_v9 = vpop.f32.mrf.mxu1 }
 0x235   :  { %v488_v11 = vadd.f32 %v1756_v9, %v1520_v58  ;;  %1781 = vmatprep.mubr.bf16.mxu0 %v539_v7  ;;  %v527_v18 = vmax.f32 %v477_v10, 0.0 }
 0x236   :  { %v479_v13 = vpop.f32.mrf.mxu1  ;;  %1782 = vmatmul.mubr.bf16.vlgmr.msra.gmra.mxu0 %v540_v8 }
 0x237   :  { %v480_v14 = vadd.f32 %v1520_v58, %v479_v13  ;;  %v530_v15 = vmax.f32 %v488_v11, 0.0  ;;  %1830 = vmatpush3.bf16.msra.mxu0 %v2035_v57 }
 0x238   :  { %v1759_v17 = vpop.f32.mrf.mxu1  ;;  %1831 = vmatprep.subr.bf16.mxu0 %v2036_v59 }
 0x239   :  { %v528_v19 = vmax.f32 %v480_v14, 0.0  ;;  %v542_v23 = vpack.c.bf16 %v530_v15, %v529_v20  ;;  %v501_v27 = vadd.f32 %v1759_v17, %v1520_v58 }
 0x23a   :  { %v492_v21 = vpop.f32.mrf.mxu1 }
 0x23b   :  { %v541_v22 = vpack.c.bf16 %v528_v19, %v527_v18  ;;  %v493_v25 = vadd.f32 %v1520_v58, %v492_v21  ;;  %v533_v34 = vmax.f32 %v501_v27, 0.0  ;;  %1832 = vmatpush3.bf16.msra.mxu0 %v2036_v59 }
 0x23c   :  { %v1760_v24 = vpop.f32.mrf.mxu1  ;;  %1833 = vmatprep.subr.bf16.mxu0 %v2037_v60 }
 0x23d   :  { %v504_v26 = vadd.f32 %v1760_v24, %v1520_v58  ;;  %1785 = vmatprep.mubr.bf16.mxu0 %v541_v22  ;;  %v531_v32 = vmax.f32 %v493_v25, 0.0  ;;  %v2041_v24 = vld [vmem:[#allocation10 + $0x8] sm:$0xff]   ;;  %v2042_v25 = vld [vmem:[#allocation10] sm:$0xff]  }
 0x23e   :  { %v495_v28 = vpop.f32.mrf.mxu1  ;;  %1786 = vmatmul.mubr.bf16.gmra.mxu0 %v542_v23  ;;  %v2040_v23 = vld [vmem:[#allocation10 + $0x10] sm:$0xff]  }
 0x23f   :  { %v496_v29 = vadd.f32 %v1520_v58, %v495_v28  ;;  %v534_v30 = vmax.f32 %v504_v26, 0.0  ;;  %1834 = vmatpush3.bf16.msra.mxu0 %v2037_v60  ;;  %v1537_v28 = vld [vmem:[%s2396_s5] ss:$0 sm:$0xff] }
 0x240   :  { %v1763_v31 = vpop.f32.mrf.mxu1  ;;  %1835 = vmatprep.subr.bf16.mxu0 %v2038_v61 }
 0x241   :  { %v532_v33 = vmax.f32 %v496_v29, 0.0  ;;  %v544_v37 = vpack.c.bf16 %v534_v30, %v533_v34  ;;  %v517_v41 = vadd.f32 %v1763_v31, %v1520_v58 }
 0x242   :  { %v508_v35 = vpop.f32.mrf.mxu1 }
 0x243   :  { %v543_v36 = vpack.c.bf16 %v532_v33, %v531_v32  ;;  %v509_v39 = vadd.f32 %v1520_v58, %v508_v35  ;;  %v537_v54 = vmax.f32 %v517_v41, 0.0  ;;  %1836 = vmatpush3.bf16.msra.mxu0 %v2038_v61 }
 0x244   :  { %v1764_v38 = vpop.f32.mrf.mxu1 }
 0x245   :  { %v520_v40 = vadd.f32 %v1764_v38, %v1520_v58  ;;  %1789 = vmatprep.mubr.bf16.mxu0 %v543_v36  ;;  %v535_v45 = vmax.f32 %v509_v39, 0.0 }
 0x246   :  { %v511_v42 = vpop.f32.mrf.mxu1  ;;  %1790 = vmatmul.mubr.bf16.gmra.mxu0 %v544_v37 }
 0x247   :  { %v512_v43 = vadd.f32 %v1520_v58, %v511_v42  ;;  %v538_v44 = vmax.f32 %v520_v40, 0.0  ;;  %v2039_v58 = vld [vmem:[#allocation10 + $0x18] sm:$0xff]  }
 0x248   :  { %1837 = vmatprep.subr.bf16.mxu0 %v2039_v58 }
 0x249   :  { %v536_v53 = vmax.f32 %v512_v43, 0.0  ;;  %v546_v56 = vpack.c.bf16 %v538_v44, %v537_v54  ;;  %1838 = vmatpush3.bf16.msra.mxu0 %v2039_v58 }
 0x24a   :  { %1839 = vmatprep.subr.bf16.mxu0 %v2040_v23 }
 0x24b   :  { %v545_v55 = vpack.c.bf16 %v536_v53, %v535_v45 }
 0x24d   :  { %1793 = vmatprep.mubr.bf16.mxu0 %v545_v55  ;;  %1840 = vmatpush3.bf16.msra.mxu0 %v2040_v23 }
 0x24e   :  { %1794 = vmatmul.mubr.bf16.gmra.mxu0 %v546_v56  ;;  %1841 = vmatprep.subr.bf16.mxu0 %v2041_v24 }
 0x251   :  { %1842 = vmatpush3.bf16.msra.mxu0 %v2041_v24 }
 0x252   :  { %1843 = vmatprep.subr.bf16.mxu0 %v2042_v25 }
 0x255   :  { %1844 = vmatpush3.bf16.msra.mxu0 %v2042_v25 }
 0x2f6   :  { %v1783_v62 = vpop.f32.mrf.mxu0 }
 0x2f8   :  { %v645_v63 = vpop.f32.mrf.mxu0 }
 0x2fa   :  { %v1784_v0 = vpop.f32.mrf.mxu0 }
 0x2fb   :  { %v709_v21 = vpack.c.bf16 %v1784_v0, %v1783_v62 }
 0x2fc   :  { %v648_v1 = vpop.f32.mrf.mxu0 }
 0x2fd   :  { %v708_v22 = vpack.c.bf16 %v648_v1, %v645_v63 }
 0x2fe   :  { %v1787_v2 = vpop.f32.mrf.mxu0 }
 0x300   :  { %v661_v3 = vpop.f32.mrf.mxu0 }
 0x302   :  { %v1788_v4 = vpop.f32.mrf.mxu0 }
 0x303   :  { %v711_v19 = vpack.c.bf16 %v1788_v4, %v1787_v2 }
 0x304   :  { %v664_v5 = vpop.f32.mrf.mxu0 }
 0x305   :  { %v710_v20 = vpack.c.bf16 %v664_v5, %v661_v3 }
 0x306   :  { %v1791_v6 = vpop.f32.mrf.mxu0 }
 0x308   :  { %v677_v7 = vpop.f32.mrf.mxu0 }
 0x30a   :  { %v1792_v8 = vpop.f32.mrf.mxu0 }
 0x30b   :  { %v713_v17 = vpack.c.bf16 %v1792_v8, %v1791_v6 }
 0x30c   :  { %v680_v9 = vpop.f32.mrf.mxu0 }
 0x30d   :  { %v712_v18 = vpack.c.bf16 %v680_v9, %v677_v7 }
 0x30e   :  { %v1795_v10 = vpop.f32.mrf.mxu0 }
 0x310   :  { %v693_v11 = vpop.f32.mrf.mxu0 }
 0x312   :  { %v1796_v12 = vpop.f32.mrf.mxu0 }
 0x313   :  { %v715_v13 = vpack.c.bf16 %v1796_v12, %v1795_v10 }
 0x314   :  { %v696_v14 = vpop.f32.mrf.mxu0 }
 0x315   :  { %v714_v15 = vpack.c.bf16 %v696_v14, %v693_v11  ;;  %1797 = vmatprep.subr.bf16.mxu1 %v715_v13 }
 0x316   :  { %1798 = vmatpush3.bf16.msra.mxu1 %v715_v13 }
 0x317   :  { %1799 = vmatprep.subr.bf16.mxu1 %v714_v15 }
 0x31a   :  { %1800 = vmatpush3.bf16.msra.mxu1 %v714_v15 }
 0x31b   :  { %1801 = vmatprep.subr.bf16.mxu1 %v713_v17 }
 0x31e   :  { %1802 = vmatpush3.bf16.msra.mxu1 %v713_v17 }
 0x31f   :  { %1803 = vmatprep.subr.bf16.mxu1 %v712_v18 }
 0x322   :  { %1804 = vmatpush3.bf16.msra.mxu1 %v712_v18 }
 0x323   :  { %1805 = vmatprep.subr.bf16.mxu1 %v711_v19 }
 0x326   :  { %1806 = vmatpush3.bf16.msra.mxu1 %v711_v19 }
 0x327   :  { %1807 = vmatprep.subr.bf16.mxu1 %v710_v20 }
 0x32a   :  { %1808 = vmatpush3.bf16.msra.mxu1 %v710_v20 }
 0x32b   :  { %1809 = vmatprep.subr.bf16.mxu1 %v709_v21 }
 0x32e   :  { %1810 = vmatpush3.bf16.msra.mxu1 %v709_v21 }
 0x32f   :  { %1811 = vmatprep.subr.bf16.mxu1 %v708_v22 }
 0x332   :  { %1812 = vmatpush3.bf16.msra.mxu1 %v708_v22 }
 0x335   :  { %1814 = vmatmul.mubr.bf16.vlgmr.msra.gmra.mxu1 %v2311_v46 }
 0x336   :  { %1817 = vmatprep.mubr.bf16.mxu1 %v2313_v47 }
 0x33d   :  { %1818 = vmatmul.mubr.bf16.gmra.mxu1 %v2317_v48 }
 0x33e   :  { %1821 = vmatprep.mubr.bf16.mxu1 %v2319_v49 }
 0x345   :  { %1822 = vmatmul.mubr.bf16.gmra.mxu1 %v2323_v50 }
 0x346   :  { %1825 = vmatprep.mubr.bf16.mxu1 %v2325_v51 }
 0x34d   :  { %1826 = vmatmul.mubr.bf16.gmra.mxu1 %v2329_v52 }
 0x34e   :  { %1877 = vmatprep.mubr.bf16.mxu1 %v2308_v16 }
 0x3f5   :  { %v1815_v26 = vpop.f32.mrf.mxu1 }
 0x3f6   :  { %v766_v32 = vadd.f32 %v1815_v26, %v1537_v28 }
 0x3f7   :  { %v757_v27 = vpop.f32.mrf.mxu1 }
 0x3f8   :  { %v758_v30 = vadd.f32 %v1537_v28, %v757_v27  ;;  %v822_v39 = vmax.f32 %v766_v32, 0.0  ;;  %v2043_v27 = vld [vmem:[#allocation11 + $0x38] sm:$0xff]  }
 0x3f9   :  { %v1816_v29 = vpop.f32.mrf.mxu1  ;;  %1893 = vmatprep.subr.bf16.mxu0 %v2043_v27 }
 0x3fa   :  { %v769_v31 = vadd.f32 %v1816_v29, %v1537_v28  ;;  %v820_v37 = vmax.f32 %v758_v30, 0.0  ;;  %v2044_v29 = vld [vmem:[#allocation11 + $0x30] sm:$0xff]   ;;  %v2045_v30 = vld [vmem:[#allocation11 + $0x28] sm:$0xff]  }
 0x3fb   :  { %v760_v33 = vpop.f32.mrf.mxu1 }
 0x3fc   :  { %v761_v34 = vadd.f32 %v1537_v28, %v760_v33  ;;  %v823_v35 = vmax.f32 %v769_v31, 0.0  ;;  %v2046_v31 = vld [vmem:[#allocation11 + $0x20] sm:$0xff]  }
 0x3fd   :  { %v1819_v36 = vpop.f32.mrf.mxu1 }
 0x3fe   :  { %v821_v38 = vmax.f32 %v761_v34, 0.0  ;;  %v837_v42 = vpack.c.bf16 %v823_v35, %v822_v39  ;;  %v782_v53 = vadd.f32 %v1819_v36, %v1537_v28 }
 0x3ff   :  { %v773_v40 = vpop.f32.mrf.mxu1 }
 0x400   :  { %v836_v41 = vpack.c.bf16 %v821_v38, %v820_v37  ;;  %v774_v44 = vadd.f32 %v1537_v28, %v773_v40  ;;  %v826_v61 = vmax.f32 %v782_v53, 0.0 }
 0x401   :  { %v1820_v43 = vpop.f32.mrf.mxu1 }
 0x402   :  { %v785_v45 = vadd.f32 %v1820_v43, %v1537_v28  ;;  %1845 = vmatprep.mubr.bf16.mxu0 %v836_v41  ;;  %v824_v59 = vmax.f32 %v774_v44, 0.0 }
 0x403   :  { %v776_v54 = vpop.f32.mrf.mxu1  ;;  %1846 = vmatmul.mubr.bf16.vlgmr.msra.gmra.mxu0 %v837_v42 }
 0x404   :  { %v777_v55 = vadd.f32 %v1537_v28, %v776_v54  ;;  %v827_v56 = vmax.f32 %v785_v45, 0.0  ;;  %1894 = vmatpush3.bf16.msra.mxu0 %v2043_v27 }
 0x405   :  { %v1823_v57 = vpop.f32.mrf.mxu1  ;;  %1895 = vmatprep.subr.bf16.mxu0 %v2044_v29 }
 0x406   :  { %v825_v60 = vmax.f32 %v777_v55, 0.0  ;;  %v839_v63 = vpack.c.bf16 %v827_v56, %v826_v61  ;;  %v798_v3 = vadd.f32 %v1823_v57, %v1537_v28 }
 0x407   :  { %v789_v58 = vpop.f32.mrf.mxu1 }
 0x408   :  { %v838_v62 = vpack.c.bf16 %v825_v60, %v824_v59  ;;  %v790_v1 = vadd.f32 %v1537_v28, %v789_v58  ;;  %v830_v10 = vmax.f32 %v798_v3, 0.0  ;;  %1896 = vmatpush3.bf16.msra.mxu0 %v2044_v29 }
 0x409   :  { %v1824_v0 = vpop.f32.mrf.mxu1  ;;  %1897 = vmatprep.subr.bf16.mxu0 %v2045_v30 }
 0x40a   :  { %v801_v2 = vadd.f32 %v1824_v0, %v1537_v28  ;;  %1849 = vmatprep.mubr.bf16.mxu0 %v838_v62  ;;  %v828_v8 = vmax.f32 %v790_v1, 0.0  ;;  %v2049_v0 = vld [vmem:[#allocation11 + $0x8] sm:$0xff]   ;;  %v2050_v1 = vld [vmem:[#allocation11] sm:$0xff]  }
 0x40b   :  { %v792_v4 = vpop.f32.mrf.mxu1  ;;  %1850 = vmatmul.mubr.bf16.gmra.mxu0 %v839_v63  ;;  %v2048_v63 = vld [vmem:[#allocation11 + $0x10] sm:$0xff]  }
 0x40c   :  { %v793_v5 = vadd.f32 %v1537_v28, %v792_v4  ;;  %v831_v6 = vmax.f32 %v801_v2, 0.0  ;;  %1898 = vmatpush3.bf16.msra.mxu0 %v2045_v30  ;;  %v1546_v4 = vld [vmem:[%s2398_s7] ss:$0 sm:$0xff] }
 0x40d   :  { %v1827_v7 = vpop.f32.mrf.mxu1  ;;  %1899 = vmatprep.subr.bf16.mxu0 %v2046_v31 }
 0x40e   :  { %v829_v9 = vmax.f32 %v793_v5, 0.0  ;;  %v841_v13 = vpack.c.bf16 %v831_v6, %v830_v10  ;;  %v814_v18 = vadd.f32 %v1827_v7, %v1537_v28 }
 0x40f   :  { %v805_v11 = vpop.f32.mrf.mxu1 }
 0x410   :  { %v840_v12 = vpack.c.bf16 %v829_v9, %v828_v8  ;;  %v806_v15 = vadd.f32 %v1537_v28, %v805_v11  ;;  %v834_v24 = vmax.f32 %v814_v18, 0.0  ;;  %1900 = vmatpush3.bf16.msra.mxu0 %v2046_v31 }
 0x411   :  { %v1828_v14 = vpop.f32.mrf.mxu1 }
 0x412   :  { %v817_v17 = vadd.f32 %v1828_v14, %v1537_v28  ;;  %1853 = vmatprep.mubr.bf16.mxu0 %v840_v12  ;;  %v832_v22 = vmax.f32 %v806_v15, 0.0 }
 0x413   :  { %v808_v19 = vpop.f32.mrf.mxu1  ;;  %1854 = vmatmul.mubr.bf16.gmra.mxu0 %v841_v13 }
 0x414   :  { %v809_v20 = vadd.f32 %v1537_v28, %v808_v19  ;;  %v835_v21 = vmax.f32 %v817_v17, 0.0  ;;  %v2047_v28 = vld [vmem:[#allocation11 + $0x18] sm:$0xff]  }
 0x415   :  { %1901 = vmatprep.subr.bf16.mxu0 %v2047_v28 }
 0x416   :  { %v833_v23 = vmax.f32 %v809_v20, 0.0  ;;  %v843_v26 = vpack.c.bf16 %v835_v21, %v834_v24  ;;  %1902 = vmatpush3.bf16.msra.mxu0 %v2047_v28 }
 0x417   :  { %1903 = vmatprep.subr.bf16.mxu0 %v2048_v63 }
 0x418   :  { %v842_v25 = vpack.c.bf16 %v833_v23, %v832_v22 }
 0x41a   :  { %1857 = vmatprep.mubr.bf16.mxu0 %v842_v25  ;;  %1904 = vmatpush3.bf16.msra.mxu0 %v2048_v63 }
 0x41b   :  { %1858 = vmatmul.mubr.bf16.gmra.mxu0 %v843_v26  ;;  %1905 = vmatprep.subr.bf16.mxu0 %v2049_v0 }
 0x41e   :  { %1906 = vmatpush3.bf16.msra.mxu0 %v2049_v0 }
 0x41f   :  { %1907 = vmatprep.subr.bf16.mxu0 %v2050_v1 }
 0x422   :  { %1908 = vmatpush3.bf16.msra.mxu0 %v2050_v1 }
 0x4c3   :  { %v1847_v32 = vpop.f32.mrf.mxu0 }
 0x4c5   :  { %v942_v33 = vpop.f32.mrf.mxu0 }
 0x4c7   :  { %v1848_v34 = vpop.f32.mrf.mxu0 }
 0x4c8   :  { %v1006_v58 = vpack.c.bf16 %v1848_v34, %v1847_v32 }
 0x4c9   :  { %v945_v35 = vpop.f32.mrf.mxu0 }
 0x4ca   :  { %v1005_v62 = vpack.c.bf16 %v945_v35, %v942_v33 }
 0x4cb   :  { %v1851_v36 = vpop.f32.mrf.mxu0 }
 0x4cd   :  { %v958_v37 = vpop.f32.mrf.mxu0 }
 0x4cf   :  { %v1852_v38 = vpop.f32.mrf.mxu0 }
 0x4d0   :  { %v1008_v60 = vpack.c.bf16 %v1852_v38, %v1851_v36 }
 0x4d1   :  { %v961_v39 = vpop.f32.mrf.mxu0 }
 0x4d2   :  { %v1007_v61 = vpack.c.bf16 %v961_v39, %v958_v37 }
 0x4d3   :  { %v1855_v40 = vpop.f32.mrf.mxu0 }
 0x4d5   :  { %v974_v41 = vpop.f32.mrf.mxu0 }
 0x4d7   :  { %v1856_v42 = vpop.f32.mrf.mxu0 }
 0x4d8   :  { %v1010_v57 = vpack.c.bf16 %v1856_v42, %v1855_v40 }
 0x4d9   :  { %v977_v43 = vpop.f32.mrf.mxu0 }
 0x4da   :  { %v1009_v59 = vpack.c.bf16 %v977_v43, %v974_v41 }
 0x4db   :  { %v1859_v44 = vpop.f32.mrf.mxu0 }
 0x4dd   :  { %v990_v45 = vpop.f32.mrf.mxu0 }
 0x4df   :  { %v1860_v53 = vpop.f32.mrf.mxu0 }
 0x4e0   :  { %v1012_v54 = vpack.c.bf16 %v1860_v53, %v1859_v44 }
 0x4e1   :  { %v993_v55 = vpop.f32.mrf.mxu0 }
 0x4e2   :  { %v1011_v56 = vpack.c.bf16 %v993_v55, %v990_v45  ;;  %1861 = vmatprep.subr.bf16.mxu1 %v1012_v54 }
 0x4e3   :  { %1862 = vmatpush3.bf16.msra.mxu1 %v1012_v54 }
 0x4e4   :  { %1863 = vmatprep.subr.bf16.mxu1 %v1011_v56 }
 0x4e7   :  { %1864 = vmatpush3.bf16.msra.mxu1 %v1011_v56 }
 0x4e8   :  { %1865 = vmatprep.subr.bf16.mxu1 %v1010_v57 }
 0x4eb   :  { %1866 = vmatpush3.bf16.msra.mxu1 %v1010_v57 }
 0x4ec   :  { %1867 = vmatprep.subr.bf16.mxu1 %v1009_v59 }
 0x4ef   :  { %1868 = vmatpush3.bf16.msra.mxu1 %v1009_v59 }
 0x4f0   :  { %1869 = vmatprep.subr.bf16.mxu1 %v1008_v60 }
 0x4f3   :  { %1870 = vmatpush3.bf16.msra.mxu1 %v1008_v60 }
 0x4f4   :  { %1871 = vmatprep.subr.bf16.mxu1 %v1007_v61 }
 0x4f7   :  { %1872 = vmatpush3.bf16.msra.mxu1 %v1007_v61 }
 0x4f8   :  { %1873 = vmatprep.subr.bf16.mxu1 %v1006_v58 }
 0x4fb   :  { %1874 = vmatpush3.bf16.msra.mxu1 %v1006_v58 }
 0x4fc   :  { %1875 = vmatprep.subr.bf16.mxu1 %v1005_v62 }
 0x4ff   :  { %1876 = vmatpush3.bf16.msra.mxu1 %v1005_v62 }
 0x502   :  { %1878 = vmatmul.mubr.bf16.vlgmr.msra.gmra.mxu1 %v2311_v46 }
 0x503   :  { %1881 = vmatprep.mubr.bf16.mxu1 %v2313_v47 }
 0x50a   :  { %1882 = vmatmul.mubr.bf16.gmra.mxu1 %v2317_v48 }
 0x50b   :  { %1885 = vmatprep.mubr.bf16.mxu1 %v2319_v49 }
 0x512   :  { %1886 = vmatmul.mubr.bf16.gmra.mxu1 %v2323_v50 }
 0x513   :  { %1889 = vmatprep.mubr.bf16.mxu1 %v2325_v51 }
 0x51a   :  { %1890 = vmatmul.mubr.bf16.gmra.mxu1 %v2329_v52 }
 0x51b   :  { %1941 = vmatprep.mubr.bf16.mxu1 %v2308_v16 }
 0x5c2   :  { %v1879_v2 = vpop.f32.mrf.mxu1 }
 0x5c3   :  { %v1063_v8 = vadd.f32 %v1879_v2, %v1546_v4 }
 0x5c4   :  { %v1054_v3 = vpop.f32.mrf.mxu1 }
 0x5c5   :  { %v1055_v6 = vadd.f32 %v1546_v4, %v1054_v3  ;;  %v1119_v14 = vmax.f32 %v1063_v8, 0.0 }
 0x5c6   :  { %v1880_v5 = vpop.f32.mrf.mxu1 }
 0x5c7   :  { %v1066_v7 = vadd.f32 %v1880_v5, %v1546_v4  ;;  %v1117_v12 = vmax.f32 %v1055_v6, 0.0 }
 0x5c8   :  { %v1057_v16 = vpop.f32.mrf.mxu1 }
 0x5c9   :  { %v1058_v9 = vadd.f32 %v1546_v4, %v1057_v16  ;;  %v1120_v10 = vmax.f32 %v1066_v7, 0.0 }
 0x5ca   :  { %v1883_v11 = vpop.f32.mrf.mxu1 }
 0x5cb   :  { %v1118_v13 = vmax.f32 %v1058_v9, 0.0  ;;  %v1134_v18 = vpack.c.bf16 %v1120_v10, %v1119_v14  ;;  %v1079_v22 = vadd.f32 %v1883_v11, %v1546_v4 }
 0x5cc   :  { %v1070_v15 = vpop.f32.mrf.mxu1 }
 0x5cd   :  { %v1133_v17 = vpack.c.bf16 %v1118_v13, %v1117_v12  ;;  %v1071_v20 = vadd.f32 %v1546_v4, %v1070_v15  ;;  %v1123_v30 = vmax.f32 %v1079_v22, 0.0 }
 0x5ce   :  { %v1884_v19 = vpop.f32.mrf.mxu1 }
 0x5cf   :  { %v1082_v21 = vadd.f32 %v1884_v19, %v1546_v4  ;;  %1909 = vmatprep.mubr.bf16.mxu0 %v1133_v17  ;;  %v1121_v27 = vmax.f32 %v1071_v20, 0.0 }
 0x5d0   :  { %v1073_v23 = vpop.f32.mrf.mxu1  ;;  %1910 = vmatmul.mubr.bf16.vlgmr.msra.gmra.mxu0 %v1134_v18 }
 0x5d1   :  { %v1074_v24 = vadd.f32 %v1546_v4, %v1073_v23  ;;  %v1124_v25 = vmax.f32 %v1082_v21, 0.0 }
 0x5d2   :  { %v1887_v26 = vpop.f32.mrf.mxu1 }
 0x5d3   :  { %v1122_v29 = vmax.f32 %v1074_v24, 0.0  ;;  %v1136_v32 = vpack.c.bf16 %v1124_v25, %v1123_v30  ;;  %v1095_v36 = vadd.f32 %v1887_v26, %v1546_v4  ;;  %v2209_v26 = vmov 0.0  }
 0x5d4   :  { %v1086_v31 = vpop.f32.mrf.mxu1  ;;  %1957 = vmatprep.subr.mxu0 %v2209_v26 }
 0x5d5   :  { %v1135_v28 = vpack.c.bf16 %v1122_v29, %v1121_v27  ;;  %v1087_v34 = vadd.f32 %v1546_v4, %v1086_v31  ;;  %v1127_v43 = vmax.f32 %v1095_v36, 0.0 }
 0x5d6   :  { %v1888_v33 = vpop.f32.mrf.mxu1 }
 0x5d7   :  { %v1098_v35 = vadd.f32 %v1888_v33, %v1546_v4  ;;  %1913 = vmatprep.mubr.bf16.mxu0 %v1135_v28  ;;  %v1125_v41 = vmax.f32 %v1087_v34, 0.0  ;;  %v1555_v34 = vld [vmem:[%s2400_s9] ss:$0 sm:$0xff] }
 0x5d8   :  { %v1089_v37 = vpop.f32.mrf.mxu1  ;;  %1914 = vmatmul.mubr.bf16.gmra.mxu0 %v1136_v32 }
 0x5d9   :  { %v1090_v38 = vadd.f32 %v1546_v4, %v1089_v37  ;;  %v1128_v39 = vmax.f32 %v1098_v35, 0.0 }
 0x5da   :  { %v1891_v40 = vpop.f32.mrf.mxu1 }
 0x5db   :  { %v1126_v42 = vmax.f32 %v1090_v38, 0.0  ;;  %v1138_v53 = vpack.c.bf16 %v1128_v39, %v1127_v43  ;;  %v1111_v57 = vadd.f32 %v1891_v40, %v1546_v4 }
 0x5dc   :  { %v1102_v44 = vpop.f32.mrf.mxu1 }
 0x5dd   :  { %v1137_v45 = vpack.c.bf16 %v1126_v42, %v1125_v41  ;;  %v1103_v55 = vadd.f32 %v1546_v4, %v1102_v44  ;;  %v1131_v63 = vmax.f32 %v1111_v57, 0.0 }
 0x5de   :  { %v1892_v54 = vpop.f32.mrf.mxu1 }
 0x5df   :  { %v1114_v56 = vadd.f32 %v1892_v54, %v1546_v4  ;;  %1917 = vmatprep.mubr.bf16.mxu0 %v1137_v45  ;;  %v1129_v58 = vmax.f32 %v1103_v55, 0.0 }
 0x5e0   :  { %v1105_v59 = vpop.f32.mrf.mxu1  ;;  %1918 = vmatmul.mubr.bf16.gmra.mxu0 %v1138_v53 }
 0x5e1   :  { %v1106_v60 = vadd.f32 %v1546_v4, %v1105_v59  ;;  %v1132_v61 = vmax.f32 %v1114_v56, 0.0 }
 0x5e3   :  { %v1130_v62 = vmax.f32 %v1106_v60, 0.0  ;;  %v1140_v1 = vpack.c.bf16 %v1132_v61, %v1131_v63  ;;  %v1414_v61 = vld [vmem:[%s2401_s10] sm:$0xff] }
 0x5e5   :  { %v1139_v0 = vpack.c.bf16 %v1130_v62, %v1129_v58 }
 0x5e7   :  { %1921 = vmatprep.mubr.bf16.mxu0 %v1139_v0 }
 0x5e8   :  { %1922 = vmatmul.mubr.bf16.gmra.mxu0 %v1140_v1 }
 0x5e9   :  { %1989 = vmatprep.mubr.msk.f32.mxu0 %vm2210_vm0, %v2209_v26 }
 0x690   :  { %v1911_v2 = vpop.f32.mrf.mxu0 }
 0x692   :  { %v1239_v3 = vpop.f32.mrf.mxu0 }
 0x694   :  { %v1912_v5 = vpop.f32.mrf.mxu0 }
 0x695   :  { %v1303_v24 = vpack.c.bf16 %v1912_v5, %v1911_v2 }
 0x696   :  { %v1242_v6 = vpop.f32.mrf.mxu0 }
 0x697   :  { %v1302_v25 = vpack.c.bf16 %v1242_v6, %v1239_v3 }
 0x698   :  { %v1915_v7 = vpop.f32.mrf.mxu0 }
 0x69a   :  { %v1255_v8 = vpop.f32.mrf.mxu0 }
 0x69c   :  { %v1916_v16 = vpop.f32.mrf.mxu0 }
 0x69d   :  { %v1305_v22 = vpack.c.bf16 %v1916_v16, %v1915_v7 }
 0x69e   :  { %v1258_v9 = vpop.f32.mrf.mxu0 }
 0x69f   :  { %v1304_v23 = vpack.c.bf16 %v1258_v9, %v1255_v8 }
 0x6a0   :  { %v1919_v10 = vpop.f32.mrf.mxu0 }
 0x6a2   :  { %v1271_v11 = vpop.f32.mrf.mxu0 }
 0x6a4   :  { %v1920_v12 = vpop.f32.mrf.mxu0 }
 0x6a5   :  { %v1307_v20 = vpack.c.bf16 %v1920_v12, %v1919_v10 }
 0x6a6   :  { %v1274_v4 = vpop.f32.mrf.mxu0 }
 0x6a7   :  { %v1306_v21 = vpack.c.bf16 %v1274_v4, %v1271_v11 }
 0x6a8   :  { %v1923_v13 = vpop.f32.mrf.mxu0 }
 0x6aa   :  { %v1287_v14 = vpop.f32.mrf.mxu0 }
 0x6ac   :  { %v1924_v15 = vpop.f32.mrf.mxu0 }
 0x6ad   :  { %v1309_v17 = vpack.c.bf16 %v1924_v15, %v1923_v13 }
 0x6ae   :  { %v1290_v18 = vpop.f32.mrf.mxu0 }
 0x6af   :  { %v1308_v19 = vpack.c.bf16 %v1290_v18, %v1287_v14  ;;  %1925 = vmatprep.subr.bf16.mxu1 %v1309_v17 }
 0x6b0   :  { %1926 = vmatpush3.bf16.msra.mxu1 %v1309_v17 }
 0x6b1   :  { %1927 = vmatprep.subr.bf16.mxu1 %v1308_v19 }
 0x6b4   :  { %1928 = vmatpush3.bf16.msra.mxu1 %v1308_v19 }
 0x6b5   :  { %1929 = vmatprep.subr.bf16.mxu1 %v1307_v20 }
 0x6b8   :  { %1930 = vmatpush3.bf16.msra.mxu1 %v1307_v20 }
 0x6b9   :  { %1931 = vmatprep.subr.bf16.mxu1 %v1306_v21 }
 0x6bc   :  { %1932 = vmatpush3.bf16.msra.mxu1 %v1306_v21 }
 0x6bd   :  { %1933 = vmatprep.subr.bf16.mxu1 %v1305_v22 }
 0x6c0   :  { %1934 = vmatpush3.bf16.msra.mxu1 %v1305_v22 }
 0x6c1   :  { %1935 = vmatprep.subr.bf16.mxu1 %v1304_v23 }
 0x6c4   :  { %1936 = vmatpush3.bf16.msra.mxu1 %v1304_v23 }
 0x6c5   :  { %1937 = vmatprep.subr.bf16.mxu1 %v1303_v24 }
 0x6c8   :  { %1938 = vmatpush3.bf16.msra.mxu1 %v1303_v24 }
 0x6c9   :  { %1939 = vmatprep.subr.bf16.mxu1 %v1302_v25 }
 0x6cc   :  { %1940 = vmatpush3.bf16.msra.mxu1 %v1302_v25 }
 0x6cf   :  { %1942 = vmatmul.mubr.bf16.vlgmr.msra.gmra.mxu1 %v2311_v46 }
 0x6d0   :  { %1945 = vmatprep.mubr.bf16.mxu1 %v2313_v47 }
 0x6d7   :  { %1946 = vmatmul.mubr.bf16.gmra.mxu1 %v2317_v48 }
 0x6d8   :  { %1949 = vmatprep.mubr.bf16.mxu1 %v2319_v49 }
 0x6df   :  { %1950 = vmatmul.mubr.bf16.gmra.mxu1 %v2323_v50 }
 0x6e0   :  { %1953 = vmatprep.mubr.bf16.mxu1 %v2325_v51 }
 0x6e7   :  { %1954 = vmatmul.mubr.bf16.gmra.mxu1 %v2329_v52 }
 0x78f   :  { %v1943_v27 = vpop.f32.mrf.mxu1 }
 0x790   :  { %v1360_v57 = vadd.f32 %v1943_v27, %v1555_v34 }
 0x791   :  { %v1351_v46 = vpop.f32.mrf.mxu1 }
 0x792   :  { %v1352_v60 = vadd.f32 %v1555_v34, %v1351_v46 }
 0x793   :  { %v1944_v29 = vpop.f32.mrf.mxu1 }
 0x794   :  { %v1363_v56 = vadd.f32 %v1944_v29, %v1555_v34 }
 0x795   :  { %v1354_v47 = vpop.f32.mrf.mxu1 }
 0x796   :  { %v1355_v59 = vadd.f32 %v1555_v34, %v1354_v47 }
 0x797   :  { %v1947_v30 = vpop.f32.mrf.mxu1 }
 0x798   :  { %v1376_v53 = vadd.f32 %v1947_v30, %v1555_v34 }
 0x799   :  { %v1367_v48 = vpop.f32.mrf.mxu1 }
 0x79a   :  { %v1368_v55 = vadd.f32 %v1555_v34, %v1367_v48 }
 0x79b   :  { %v1948_v31 = vpop.f32.mrf.mxu1 }
 0x79c   :  { %v1379_v45 = vadd.f32 %v1948_v31, %v1555_v34 }
 0x79d   :  { %v1370_v49 = vpop.f32.mrf.mxu1 }
 0x79e   :  { %v1371_v54 = vadd.f32 %v1555_v34, %v1370_v49 }
 0x79f   :  { %v1951_v28 = vpop.f32.mrf.mxu1 }
 0x7a0   :  { %v1392_v42 = vadd.f32 %v1951_v28, %v1555_v34 }
 0x7a1   :  { %v1383_v50 = vpop.f32.mrf.mxu1 }
 0x7a2   :  { %v1384_v44 = vadd.f32 %v1555_v34, %v1383_v50 }
 0x7a3   :  { %v1952_v32 = vpop.f32.mrf.mxu1 }
 0x7a4   :  { %v1395_v41 = vadd.f32 %v1952_v32, %v1555_v34 }
 0x7a5   :  { %v1386_v51 = vpop.f32.mrf.mxu1 }
 0x7a6   :  { %v1387_v43 = vadd.f32 %v1555_v34, %v1386_v51 }
 0x7a7   :  { %v1955_v33 = vpop.f32.mrf.mxu1 }
 0x7a8   :  { %v1408_v38 = vadd.f32 %v1955_v33, %v1555_v34 }
 0x7a9   :  { %v1399_v52 = vpop.f32.mrf.mxu1 }
 0x7aa   :  { %v1400_v40 = vadd.f32 %v1555_v34, %v1399_v52 }
 0x7ab   :  { %v1956_v35 = vpop.f32.mrf.mxu1 }
 0x7ac   :  { %v1411_v36 = vadd.f32 %v1956_v35, %v1555_v34 }
 0x7ad   :  { %v1402_v37 = vpop.f32.mrf.mxu1 }
 0x7ae   :  { %1958 = vmatpush3.msra.mxu0 %v1411_v36  ;;  %v1403_v39 = vadd.f32 %v1555_v34, %v1402_v37 }
 0x7af   :  { %1959 = vmatprep.subr.mxu0 %v2209_v26 }
 0x7b0   :  { %1960 = vmatpush3.msra.mxu0 %v1408_v38 }
 0x7b1   :  { %1961 = vmatprep.subr.mxu0 %v2209_v26 }
 0x7b2   :  { %1962 = vmatpush3.msra.mxu0 %v1403_v39 }
 0x7b3   :  { %1963 = vmatprep.subr.mxu0 %v2209_v26 }
 0x7b4   :  { %1964 = vmatpush3.msra.mxu0 %v1400_v40 }
 0x7b5   :  { %1965 = vmatprep.subr.mxu0 %v2209_v26 }
 0x7b6   :  { %1966 = vmatpush3.msra.mxu0 %v1395_v41 }
 0x7b7   :  { %1967 = vmatprep.subr.mxu0 %v2209_v26 }
 0x7b8   :  { %1968 = vmatpush3.msra.mxu0 %v1392_v42 }
 0x7b9   :  { %1969 = vmatprep.subr.mxu0 %v2209_v26 }
 0x7ba   :  { %1970 = vmatpush3.msra.mxu0 %v1387_v43 }
 0x7bb   :  { %1971 = vmatprep.subr.mxu0 %v2209_v26 }
 0x7bc   :  { %1972 = vmatpush3.msra.mxu0 %v1384_v44 }
 0x7bd   :  { %1973 = vmatprep.subr.mxu0 %v2209_v26 }
 0x7be   :  { %1974 = vmatpush3.msra.mxu0 %v1379_v45 }
 0x7bf   :  { %1975 = vmatprep.subr.mxu0 %v2209_v26 }
 0x7c0   :  { %1976 = vmatpush3.msra.mxu0 %v1376_v53 }
 0x7c1   :  { %1977 = vmatprep.subr.mxu0 %v2209_v26 }
 0x7c2   :  { %1978 = vmatpush3.msra.mxu0 %v1371_v54 }
 0x7c3   :  { %1979 = vmatprep.subr.mxu0 %v2209_v26 }
 0x7c4   :  { %1980 = vmatpush3.msra.mxu0 %v1368_v55 }
 0x7c5   :  { %1981 = vmatprep.subr.mxu0 %v2209_v26 }
 0x7c6   :  { %1982 = vmatpush3.msra.mxu0 %v1363_v56 }
 0x7c7   :  { %1983 = vmatprep.subr.mxu0 %v2209_v26 }
 0x7c8   :  { %1984 = vmatpush3.msra.mxu0 %v1360_v57 }
 0x7c9   :  { %1985 = vmatprep.subr.mxu0 %v2209_v26 }
 0x7ca   :  { %1986 = vmatpush3.msra.mxu0 %v1355_v59 }
 0x7cb   :  { %1987 = vmatprep.subr.mxu0 %v2209_v26 }
 0x7cc   :  { %1988 = vmatpush3.msra.mxu0 %v1352_v60 }
 0x7cd   :  { %1990 = vmatmul.mubr.f32.vlgmr.msra.gmra.mxu0 %v1414_v61 }
 0x88d   :  { %v1481_v58 = vpop.f32.mrf.mxu0 }
 0x88e   :  { %1485 = vst [vmem:[#allocation13] sm:$0xff] %v1481_v58 }
 0x88f   :  { %v1991_v62 = vpop.f32.mrf.mxu0 }
 0x890   :  { %2182 = shalt.err (!%p2179_p6)
}
 0x891   :  { %1495 = dma.vmem_to_hbm [thread:$0]  %s1493_s12, 128, %s2402_s11, [#allocation4]  }
 0x892   :  { %2199 = dma.done.wait [#allocation4], 128  }
 0x893   :  { %2200 = vsyncadd [#allocation4], 4294967168 }
 0x894   :  { %1499 = vsyncpa [#allocation3], 1 }
 0x895   :  { %1500 = vsyncpa [#allocation6], 1 }
 0x896   :  { %1501 = vsyncpa [#allocation9], 1 }
 0x897   :  { %1502 = vsyncpa [#allocation12], 1 }
 0x898   :  { %1503 = vsyncpa [#allocation4], 1 }

</bundles_post_ra>
